<compile_context>
chip_gen: v6e
topology: v6e:2x2x1
jax: 0.10.0
libtpu: 0.0.40
codegen_flags: <defaults>
</compile_context>

<pallas_src>
from functools import partial

import jax
import jax.numpy as jnp
from jax.experimental import pallas as pl
from jax.experimental.pallas import tpu as pltpu

_LANE_WIDTH = 2048                      # lane-dense slab width (multiple of 128)
_TARGET_BLOCK_BYTES = 8 * 1024 * 1024   # ~8 MiB input tile per grid step


def _round_up(x: int, m: int) -> int:
    return ((x + m - 1) // m) * m


def _round_down(x: int, m: int) -> int:
    return (x // m) * m


def _lin_reg_kernel(w_ref, b_ref, x_ref, o_ref):
    # w_ref / b_ref: (1, 1) f32 scalars in SMEM; x_ref / o_ref: (tm, tn) VMEM tiles.
    w = w_ref[0, 0]
    b = b_ref[0, 0]
    x = x_ref[...]
    o_ref[...] = (x.astype(jnp.float32) * w + b).astype(o_ref.dtype)


def _run_main_slab(x2d: jax.Array, w32: jax.Array, b32: jax.Array,
                   block_bytes: int) -> jax.Array:
    """Run the elementwise kernel over a lane-dense (rows, 2048) slab."""
    rows, tn = x2d.shape
    dtype = x2d.dtype
    itemsize = jnp.dtype(dtype).itemsize

    # dtype-aware sublane packing: 8 rows (f32), 16 (bf16/f16), 32 (int8/fp8)
    sub = 8 * max(1, 4 // itemsize)

    tm_max = max(sub, _round_down(max(1, block_bytes // (tn * itemsize)), sub))
    if rows > tm_max:
        tm = tm_max
    elif rows >= 2 * sub:
        # keep >= 2 grid steps so a v7x chip can split the parallel axis
        # across both TensorCores.
        tm = _round_up(-(-rows // 2), sub)
    else:
        tm = rows            # block == full array dim (any row count allowed)

    grid = (pl.cdiv(rows, tm),)           # partial last tile is masked by Pallas
    tile_bytes = tm * tn * itemsize
    vmem_limit = max(32 * 1024 * 1024, 4 * tile_bytes + 8 * 1024 * 1024)

    return pl.pallas_call(
        _lin_reg_kernel,
        out_shape=jax.ShapeDtypeStruct((rows, tn), dtype),
        grid=grid,
        in_specs=[
            # f32 scalars: whole (1,1) array in SMEM, same block every step
            pl.BlockSpec((1, 1), lambda i: (0, 0), memory_space=pltpu.SMEM),
            pl.BlockSpec((1, 1), lambda i: (0, 0), memory_space=pltpu.SMEM),
            # x: large row tiles spanning the full (lane-dense) slab width
            pl.BlockSpec((tm, tn), lambda i: (i, 0)),
        ],
        out_specs=pl.BlockSpec((tm, tn), lambda i: (i, 0)),
        compiler_params=pltpu.CompilerParams(
            dimension_semantics=("parallel",),
            vmem_limit_bytes=vmem_limit,
        ),
        cost_estimate=pl.CostEstimate(
            flops=2 * rows * tn,
            transcendentals=0,
            bytes_accessed=2 * rows * tn * itemsize,   # read x + write y
        ),
    )(w32, b32, x2d)


@partial(jax.jit, static_argnums=(3,))
def _lin_reg_impl(x: jax.Array, w: jax.Array, b: jax.Array,
                  block_bytes: int) -> jax.Array:
    orig_shape = x.shape
    dtype = x.dtype
    total = int(x.size)

    w32 = jnp.asarray(w, jnp.float32).reshape(1, 1)
    b32 = jnp.asarray(b, jnp.float32).reshape(1, 1)

    if total == 0:
        return x

    tn = _LANE_WIDTH
    rows_main = total // tn
    main_count = rows_main * tn
    tail_count = total - main_count

    x_flat = x.reshape(-1)               # bitcast under jit

    pieces = []
    if rows_main > 0:
        if tail_count > 0:
            x_main = x_flat[:main_count].reshape(rows_main, tn)
        else:
            x_main = x_flat.reshape(rows_main, tn)   # fully zero-copy path
        y_main = _run_main_slab(x_main, w32, b32, block_bytes)
        pieces.append(y_main.reshape(-1))
    if tail_count > 0:
        # tiny ragged tail (< 2048 elements): plain jnp, negligible traffic
        x_tail = x_flat[main_count:]
        y_tail = (x_tail.astype(jnp.float32) * w32[0, 0] + b32[0, 0]).astype(dtype)
        pieces.append(y_tail)

    y_flat = pieces[0] if len(pieces) == 1 else jnp.concatenate(pieces)
    return y_flat.reshape(orig_shape)


def lin_reg(x: jax.Array, w: jax.Array, b: jax.Array, *,
            block_bytes: int = _TARGET_BLOCK_BYTES) -> jax.Array:
    """y = w * x + b (scalar w, b), elementwise over an arbitrarily-shaped x."""
    return _lin_reg_impl(x, w, b, int(block_bytes))


if __name__ == "__main__":
    key = jax.random.PRNGKey(0)
    k1, k2, k3, k4, k5 = jax.random.split(key, 5)

    def ref(x, w, b):
        return (x.astype(jnp.float32) * jnp.float32(w) + jnp.float32(b)).astype(x.dtype)

    # Parameters matching the PyTorch module's init.
    w0 = jnp.array([1.0], dtype=jnp.float32)
    b0 = jnp.array([0.0], dtype=jnp.float32)

    # 1) aligned slab, 2-step parallel grid, zero-copy wrapper path
    x1 = jax.random.normal(k1, (16, 2048), dtype=jnp.float32)
    y1 = lin_reg(x1, w0, b0)
    jax.block_until_ready(y1)
    assert jnp.allclose(y1, ref(x1, 1.0, 0.0), atol=1e-6), "mismatch (case 1)"

    # 2) tiny ragged input (< one slab row) -> pure jnp path
    w1 = jnp.array([2.5], dtype=jnp.float32)
    b1 = jnp.array([-0.75], dtype=jnp.float32)
    x2 = jax.random.normal(k2, (3, 50, 7), dtype=jnp.float32)
    y2 = lin_reg(x2, w1, b1)
    jax.block_until_ready(y2)
    assert jnp.allclose(y2, ref(x2, 2.5, -0.75), atol=1e-5), "mismatch (case 2)"

    # 3) mixed path: aligned main slab + ragged tail
    x3 = jax.random.normal(k3, (5, 1000), dtype=jnp.float32)
    y3 = lin_reg(x3, w1, b1)
    jax.block_until_ready(y3)
    assert jnp.allclose(y3, ref(x3, 2.5, -0.75), atol=1e-5), "mismatch (case 3)"

    # 4) bf16 input: dtype-aware sublane rounding, f32 SMEM params
    x4 = jax.random.normal(k4, (64, 2048), dtype=jnp.bfloat16)
    y4 = lin_reg(x4, w1, b1)
    jax.block_until_ready(y4)
    assert jnp.allclose(y4.astype(jnp.float32), ref(x4, 2.5, -0.75).astype(jnp.float32),
                        atol=1e-2), "mismatch (case 4)"

    # 5) small tiles via override: multi-step grid with a masked partial last tile
    x5 = jax.random.normal(k5, (44, 2048), dtype=jnp.float32)
    y5 = lin_reg(x5, w1, b1, block_bytes=64 * 1024)
    jax.block_until_ready(y5)
    assert jnp.allclose(y5, ref(x5, 2.5, -0.75), atol=1e-5), "mismatch (case 5)"

    print("KERNEL_OK")
</pallas_src>

<mosaic_0001>
module attributes {stable_mosaic.version = 11 : i64} {
  func.func @_lin_reg_kernel(%arg0: i32, %arg1: memref<1x1xf32, #tpu.memory_space<smem>>, %arg2: memref<1x1xf32, #tpu.memory_space<smem>>, %arg3: memref<8x2048xf32, #tpu.memory_space<vmem>>, %arg4: memref<8x2048xf32, #tpu.memory_space<vmem>>) attributes {dimension_semantics = [#tpu.dimension_semantics<parallel>], iteration_bounds = array<i64: 2>, scalar_prefetch = 0 : i64, scratch_operands = 0 : i64, tpu.core_type = #tpu.core_type<tc>, window_params = [{transform_indices = @transform_0, window_bounds = array<i64: 1, 1>}, {transform_indices = @transform_1, window_bounds = array<i64: 1, 1>}, {transform_indices = @transform_2, window_bounds = array<i64: 8, 2048>}, {transform_indices = @transform_3, window_bounds = array<i64: 8, 2048>}]} {
    %c0 = arith.constant 0 : index
    %c0_0 = arith.constant 0 : index
    %0 = memref.load %arg1[%c0, %c0_0] : memref<1x1xf32, #tpu.memory_space<smem>>
    %c0_1 = arith.constant 0 : index
    %c0_2 = arith.constant 0 : index
    %1 = memref.load %arg2[%c0_1, %c0_2] : memref<1x1xf32, #tpu.memory_space<smem>>
    %c0_3 = arith.constant 0 : index
    %c0_4 = arith.constant 0 : index
    %2 = vector.load %arg3[%c0_3, %c0_4] : memref<8x2048xf32, #tpu.memory_space<vmem>>, vector<8x2048xf32>
    %3 = vector.broadcast %0 : f32 to vector<8x2048xf32>
    %4 = arith.mulf %2, %3 : vector<8x2048xf32>
    %5 = vector.broadcast %1 : f32 to vector<8x2048xf32>
    %6 = arith.addf %4, %5 : vector<8x2048xf32>
    %c0_5 = arith.constant 0 : index
    %c0_6 = arith.constant 0 : index
    %7 = vector.load %arg4[%c0_5, %c0_6] : memref<8x2048xf32, #tpu.memory_space<vmem>>, vector<8x2048xf32>
    tpu.vector_store %arg4[%c0_5, %c0_6], %6 {strides = array<i32>} : memref<8x2048xf32, #tpu.memory_space<vmem>>, vector<8x2048xf32>,
    return
  }
  func.func @transform_0(%arg0: i32) -> (i32, i32) {
    %c0_i32 = arith.constant 0 : i32
    %c0_i32_0 = arith.constant 0 : i32
    %c0_i32_1 = arith.constant 0 : i32
    return %c0_i32, %c0_i32_0 : i32, i32
  }
  func.func @transform_1(%arg0: i32) -> (i32, i32) {
    %c0_i32 = arith.constant 0 : i32
    %c0_i32_0 = arith.constant 0 : i32
    %c0_i32_1 = arith.constant 0 : i32
    return %c0_i32, %c0_i32_0 : i32, i32
  }
  func.func @transform_2(%arg0: i32) -> (i32, i32) {
    %c0_i32 = arith.constant 0 : i32
    %c0_i32_0 = arith.constant 0 : i32
    return %arg0, %c0_i32 : i32, i32
  }
  func.func @transform_3(%arg0: i32) -> (i32, i32) {
    %c0_i32 = arith.constant 0 : i32
    %c0_i32_0 = arith.constant 0 : i32
    return %arg0, %c0_i32 : i32, i32
  }
}

</mosaic_0001>

<bundles_post_ra>
// kernel: _lin_reg_impl.1
= control target key start
LH: loop header
LB: loop body
LE: loop exit
PB: predicated region body
PF: predicated region fallthrough
CT: control target
= control target key end

     0   :  { %s714_s0 = inlined_call_operand.<no memory space> [shape: f32[1,1], index: 0, kind: input, shape index: {}]   ;;  %s715_s1 = inlined_call_operand.<no memory space> [shape: f32[1,1], index: 1, kind: input, shape index: {}]   ;;  %s716_s2 = inlined_call_operand.hbm [shape: f32[16,2048], index: 2, kind: input, shape index: {}]   ;;  %s717_s3 = inlined_call_operand.hbm [shape: f32[16,2048], index: 3, kind: output, shape index: {}]  }
   0x1   :  { %8 = sst [smem:[#allocation2]] %s714_s0 }
   0x2   :  { %9 = sst [smem:[#allocation3]] %s715_s1 }
   0x3   :  { %10 = vsyncpa [#allocation5], 0 }
   0x4   :  { %12 = vsyncpa [#allocation5 + $0x1], 0 }
   0x5   :  { %13 = vsyncpa [#allocation6], 0 }
   0x6   :  { %15 = vsyncpa [#allocation6 + $0x1], 0  ;;  %s526_s16 = smov 0   ;;  %s528_s17 = smov 0  }
   0x7   :  { %s530_s18 = smov 0   ;;  %s532_s19 = smov 0  }
   0x8 LB: > { %s547_s0 = sadd.s32 4294967295, %s496_s19   ;;  %s342_s1 = sadd.s32 4294967294, %s496_s19   ;;  %s496_s19 = sphi %s532_s19, %s734_s19   ;;  %s492_s18 = sphi %s530_s18, %s733_s18   ;;  %s488_s17 = sphi %s528_s17, %s732_s17   ;;  %s484_s16 = sphi %s526_s16, %s731_s16  }
   0x9   : > { %s551_s20 = sadd.s32 1, %s496_s19   ;;  %s70_s21 = sadd.s32 1, %s492_s18 }
   0xa   : > { %s67_s22 = ssub.s32 %s496_s19, %s551_s20  ;;  %p77_p0 = scmp.ne.s32.totalorder %s492_s18, %s488_s17 }
   0xb   : > { %p68_p1 = scmp.eq.s32.totalorder %s67_s22, 0  ;;  %p78_p2 = scmp.eq.s32.totalorder %s496_s19, 0 }
   0xc   : > { %p83_p3 = scmp.ne.s32.totalorder %s488_s17, %s484_s16  ;;  %p84_p4 = scmp.eq.s32.totalorder %s547_s0, 0 }
   0xd   : > { %s563_s23 = scalar_select %p68_p1, %s492_s18, %s70_s21  }
   0xe   : > { %p565_p5 = por %p78_p2, %p77_p0  ;;  %p569_p6 = por %p84_p4, %p83_p3 }
   0xf   : > { %p107_p7 = scmp.eq.s32.totalorder %s547_s0, 1  ;;  %p113_p8 = scmp.eq.s32.totalorder %s342_s1, 1 }
  0x10   : > { %s721_s25 = scalar_select %p569_p6, 1, 0 }
  0x11   : > { %p370_p10 = scmp.lt.s32.totalorder %s496_s19, 2  ;;  %p576_p11 = por %p107_p7, %p77_p0 }
  0x12   : > { %p580_p12 = por %p113_p8, %p83_p3  ;;  %s139_s28 = sand.u32 1, %s492_s18  }
  0x13   : > { %s722_s26 = scalar_select %p576_p11, 1, 0 }
  0x14   : > { %s723_s27 = scalar_select %p580_p12, 1, 0 }
  0x15   : > { %s356_s29 = sshll.u32 %s496_s19, 11  ;;  %s345_s30 = sshll.u32 %s139_s28, 7 }
  0x16   : > { %s589_s6 = scalar_lea.hbm %s716_s2, %s356_s29  ;;  %s143_s7 = scalar_lea.vmem [#allocation4], %s345_s30 }
  0x17   : > { %s151_s8 = sshll.u32 %s143_s7, 4  ;;  %p593_p13 = pnand %p370_p10, %p565_p5  ;;  %s597_s8 = int_to_ptr.vmem [resolvable:$true] %s151_s8 }
  0x18   : > { %s140_s10 = scalar_lea.sflag [#allocation5], %s139_s28  ;;  %s404_s11 = scalar_lea.hbm %s589_s6, 2048 }
  0x19   : > { %p405_p2 = scmp.ne.s32.totalorder %s589_s6, %s404_s11  ;;  %p406_p3 = pneg %p593_p13 }
  0x1a   : > { %s409_s14 = scalar_lea.hbm %s716_s2, 4096  ;;  %p410_p5 = scmp.lt.s32.totalorder %s589_s6, %s716_s2 }
  0x1b   : > { %p407_p4 = pnand %p406_p3, %p405_p2  ;;  %p411_p8 = scmp.lt.s32.totalorder %s409_s14, %s404_s11 }
  0x1d   : > { %p408_p7 = pneg %p407_p4  ;;  %p412_p10 = por %p411_p8, %p410_p5 }
  0x1f   : > { %p413_p9 = pnand %p412_p10, %p408_p7 }
  0x21   : > { %416 = shalt.err (!%p413_p9)
}
  0x22   : > { %s417_s21 = scalar_lea.vmem %s597_s8, 2048  ;;  %s498_s22 = smov [#allocation4]  }
  0x23   : > { %p418_p0 = scmp.ne.s32.totalorder %s597_s8, %s417_s21  ;;  %s422_s24 = sshll.u32 %s498_s22, 4  ;;  %s423_s24 = int_to_ptr.vmem [resolvable:$false] %s422_s24 }
  0x24   : > { %s424_s28 = scalar_lea.vmem %s423_s24, 4096  ;;  %p425_p4 = scmp.lt.s32.totalorder %s597_s8, %s423_s24 }
  0x25   : > { %p420_p1 = pnand %p418_p0, %p406_p3  ;;  %p426_p12 = scmp.lt.s32.totalorder %s424_s28, %s417_s21 }
  0x27   : > { %p421_p2 = pneg %p420_p1  ;;  %p427_p11 = por %p426_p12, %p425_p4 }
  0x29   : > { %p428_p6 = pnand %p427_p11, %p421_p2 }
  0x2b   : > { %431 = shalt.err (!%p428_p6)
}
  0x2c   : > { %365 = dma.hbm_to_vmem [thread:$0]  (!%p593_p13), %s589_s6, 2048, %s597_s8, %s140_s10  }
  0x2d   : > { %p725_p9 = scmp.lt.s32.totalorder %s496_s19, 3  ;;  %p726_p7 = scmp.ge.s32.totalorder %s496_s19, 1 }
  0x2f   : > { %p157_p0 = pnand %p726_p7, %p725_p9 }
  0x30   : > { %s624_s29 = sand.u32 (!%p157_p0), 1, %s488_s17   ;;  %p727_p6 = scmp.ne.s32.totalorder (!%p157_p0), %s721_s25, 0 }
  0x31   : > { %160 = sbr.rel (%p157_p0) target bundleno = 87 (0x57), region = 32  ;;  %s349_s30 = sshll.u32 (!%p157_p0), %s624_s29, 7 }
  0x32   : > { %s163_s4 = scalar_lea.sflag (!%p157_p0), [#allocation5], %s624_s29  ;;  %s630_s5 = scalar_lea.vmem (!%p157_p0), [#allocation4], %s349_s30 }
  0x36   : > { %475 = dma.done.wait (%p727_p6), %s163_s4, 2048  }
  0x37   : > { %477 = vsyncadd (%p727_p6), %s163_s4, 4294965248  ;;  %s189_s6 = sld [smem:[#allocation2]]  ;;  %v191_v0 = vld [vmem:[%s630_s5] sm:$0xff]  ;;  %v192_v2 = vld [vmem:[%s630_s5 + $0x8] sm:$0xff]  ;;  %s653_s25 = scalar_lea.vmem [#allocation7], %s349_s30 }
  0x38   : > { %s190_s7 = sld [smem:[#allocation3]]  ;;  %v193_v3 = vld [vmem:[%s630_s5 + $0x10] sm:$0xff]  ;;  %v194_v8 = vld [vmem:[%s630_s5 + $0x18] sm:$0xff]  ;;  %v195_v9 = vld [vmem:[%s630_s5 + $0x20] sm:$0xff]  ;;  %s357_s8 = sshll.u32 %s547_s0, 11 }
  0x39   : > { %v196_v10 = vld [vmem:[%s630_s5 + $0x28] sm:$0xff]  ;;  %v197_v14 = vld [vmem:[%s630_s5 + $0x30] sm:$0xff]  ;;  %v198_v15 = vld [vmem:[%s630_s5 + $0x38] sm:$0xff]  ;;  %s272_s9 = sshll.u32 %s653_s25, 4  ;;  %s675_s11 = scalar_lea.hbm %s717_s3, %s357_s8  ;;  %s273_s9 = int_to_ptr.vmem [resolvable:$true] %s272_s9 }
  0x3a   : > { %v199_v16 = vld [vmem:[%s630_s5 + $0x40] sm:$0xff]  ;;  %v200_v21 = vld [vmem:[%s630_s5 + $0x48] sm:$0xff]  ;;  %v201_v22 = vld [vmem:[%s630_s5 + $0x50] sm:$0xff]  ;;  %s258_s12 = scalar_lea.sflag [#allocation6], %s624_s29  ;;  %s432_s13 = scalar_lea.vmem %s273_s9, 2048 }
  0x3b   : > { %v202_v23 = vld [vmem:[%s630_s5 + $0x58] sm:$0xff]  ;;  %v203_v28 = vld [vmem:[%s630_s5 + $0x60] sm:$0xff]  ;;  %v204_v29 = vld [vmem:[%s630_s5 + $0x68] sm:$0xff]  ;;  %p433_p11 = scmp.ne.s32.totalorder %s273_s9, %s432_s13  ;;  %p728_p12 = scmp.ne.s32.totalorder %s722_s26, 0 }
  0x3c   : > { %v205_v30 = vld [vmem:[%s630_s5 + $0x70] sm:$0xff]  ;;  %v206_v35 = vld [vmem:[%s630_s5 + $0x78] sm:$0xff]  ;;  %s499_s14 = smov [#allocation7]  }
  0x3d   : > { %v207_v1 = vstv %s189_s6  ;;  %p434_p13 = pnand %p433_p11, %p728_p12  ;;  %s436_s15 = sshll.u32 %s499_s14, 4  ;;  %s437_s15 = int_to_ptr.vmem [resolvable:$false] %s436_s15 }
  0x3e   : > { %v208_v4 = vmul.f32 %v207_v1, %v191_v0  ;;  %v224_v5 = vstv %s190_s7  ;;  %v209_v6 = vmul.f32 %v207_v1, %v192_v2  ;;  %v210_v7 = vmul.f32 %v207_v1, %v193_v3  ;;  %s438_s1 = scalar_lea.vmem %s437_s15, 4096  ;;  %p439_p3 = scmp.lt.s32.totalorder %s273_s9, %s437_s15 }
  0x3f   : > { %v211_v11 = vmul.f32 %v207_v1, %v194_v8  ;;  %v212_v12 = vmul.f32 %v207_v1, %v195_v9  ;;  %v213_v13 = vmul.f32 %v207_v1, %v196_v10  ;;  %v214_v20 = vmul.f32 %v207_v1, %v197_v14  ;;  %p435_p1 = pneg %p434_p13  ;;  %p440_p5 = scmp.lt.s32.totalorder %s438_s1, %s432_s13 }
  0x40   : > { %v225_v17 = vadd.f32 %v224_v5, %v208_v4  ;;  %v226_v18 = vadd.f32 %v224_v5, %v209_v6  ;;  %v227_v19 = vadd.f32 %v224_v5, %v210_v7  ;;  %v215_v27 = vmul.f32 %v207_v1, %v198_v15 }
  0x41   : > { %v228_v24 = vadd.f32 %v224_v5, %v211_v11  ;;  %v229_v25 = vadd.f32 %v224_v5, %v212_v12  ;;  %v230_v26 = vadd.f32 %v224_v5, %v213_v13  ;;  %v231_v31 = vadd.f32 %v224_v5, %v214_v20  ;;  %p441_p8 = por %p440_p5, %p439_p3 }
  0x42   : > { %241 = vst [vmem:[%s653_s25] sm:$0xff] %v225_v17  ;;  %242 = vst [vmem:[%s653_s25 + $0x8] sm:$0xff] %v226_v18  ;;  %v216_v32 = vmul.f32 %v207_v1, %v199_v16  ;;  %v217_v33 = vmul.f32 %v207_v1, %v200_v21  ;;  %v218_v34 = vmul.f32 %v207_v1, %v201_v22 }
  0x43   : > { %243 = vst [vmem:[%s653_s25 + $0x10] sm:$0xff] %v227_v19  ;;  %244 = vst [vmem:[%s653_s25 + $0x18] sm:$0xff] %v228_v24  ;;  %v232_v36 = vadd.f32 %v224_v5, %v215_v27  ;;  %v219_v37 = vmul.f32 %v207_v1, %v202_v23  ;;  %v220_v38 = vmul.f32 %v207_v1, %v203_v28  ;;  %p442_p10 = pnand %p441_p8, %p435_p1 }
  0x44   : > { %245 = vst [vmem:[%s653_s25 + $0x20] sm:$0xff] %v229_v25  ;;  %246 = vst [vmem:[%s653_s25 + $0x28] sm:$0xff] %v230_v26  ;;  %v221_v39 = vmul.f32 %v207_v1, %v204_v29  ;;  %v233_v40 = vadd.f32 %v224_v5, %v216_v32  ;;  %v234_v41 = vadd.f32 %v224_v5, %v217_v33 }
  0x45   : > { %247 = vst [vmem:[%s653_s25 + $0x30] sm:$0xff] %v231_v31  ;;  %v235_v42 = vadd.f32 %v224_v5, %v218_v34  ;;  %v222_v43 = vmul.f32 %v207_v1, %v205_v30  ;;  %248 = vst [vmem:[%s653_s25 + $0x38] sm:$0xff] %v232_v36  ;;  %v236_v44 = vadd.f32 %v224_v5, %v219_v37 }
  0x46   : > { %v237_v45 = vadd.f32 %v224_v5, %v220_v38  ;;  %v238_v46 = vadd.f32 %v224_v5, %v221_v39  ;;  %v223_v47 = vmul.f32 %v207_v1, %v206_v35  ;;  %249 = vst [vmem:[%s653_s25 + $0x40] sm:$0xff] %v233_v40  ;;  %250 = vst [vmem:[%s653_s25 + $0x48] sm:$0xff] %v234_v41 }
  0x47   : > { %251 = vst [vmem:[%s653_s25 + $0x50] sm:$0xff] %v235_v42  ;;  %v239_v48 = vadd.f32 %v224_v5, %v222_v43  ;;  %252 = vst [vmem:[%s653_s25 + $0x58] sm:$0xff] %v236_v44 }
  0x48   : > { %253 = vst [vmem:[%s653_s25 + $0x60] sm:$0xff] %v237_v45  ;;  %254 = vst [vmem:[%s653_s25 + $0x68] sm:$0xff] %v238_v46  ;;  %v240_v49 = vadd.f32 %v224_v5, %v223_v47 }
  0x49   : > { %255 = vst [vmem:[%s653_s25 + $0x70] sm:$0xff] %v239_v48 }
  0x4a   : > { %256 = vst [vmem:[%s653_s25 + $0x78] sm:$0xff] %v240_v49 }
  0x4b   : > { %445 = shalt.err (!%p442_p10)
}
  0x4c   : > { %s446_s21 = scalar_lea.hbm %s675_s11, 2048  ;;  %s450_s28 = scalar_lea.hbm %s717_s3, 4096 }
  0x4d   : > { %p447_p2 = scmp.ne.s32.totalorder %s675_s11, %s446_s21  ;;  %p451_p7 = scmp.lt.s32.totalorder %s675_s11, %s717_s3 }
  0x4e   : > { %p452_p0 = scmp.lt.s32.totalorder %s450_s28, %s446_s21 }
  0x4f   : > { %p448_p4 = pnand %p447_p2, %p728_p12 }
  0x50   : > { %p453_p6 = por %p452_p0, %p451_p7 }
  0x51   : > { %p449_p9 = pneg %p448_p4 }
  0x53   : > { %p454_p11 = pnand %p453_p6, %p449_p9 }
  0x55   : > { %457 = shalt.err (!%p454_p11)
}
  0x56   : > { %360 = dma.vmem_to_hbm [thread:$0]  (%p728_p12), %s273_s9, 2048, %s675_s11, %s258_s12  }
  0x57 PF: > { %s284_s4 = sand.u32 1, %s484_s16   ;;  %p729_p13 = scmp.ne.s32.totalorder %s723_s27, 0 }
  0x58   : > { %p730_p1 = scmp.ge.s32.totalorder %s496_s19, 2  ;;  %s285_s5 = scalar_lea.sflag [#allocation6], %s284_s4 }
  0x5a   : > { %p367_p3 = pnand %p730_p1, %p729_p13 }
  0x5c   : > { %p368_p5 = pneg %p367_p3 }
  0x5e   : > { %479 = dma.done.wait (%p368_p5), %s285_s5, 2048  }
  0x5f   : > { %481 = vsyncadd (%p368_p5), %s285_s5, 4294965248  ;;  %p18_p8 = scmp.ge.s32.totalorder %s551_s20, 4   ;;  %s731_s16 = smov %s488_s17 }
  0x60   : > { %s732_s17 = smov %s492_s18  ;;  %s733_s18 = smov %s563_s23 }
  0x61   : > { %s734_s19 = smov %s551_s20  ;;  %20 = sbr.rel (!%p18_p8) target bundleno = 8 (0x8), region = 77 }
  0x66   :  { %290 = vsyncpa [#allocation5], 1 }
  0x67   :  { %292 = vsyncpa [#allocation5 + $0x1], 1 }
  0x68   :  { %293 = vsyncpa [#allocation6], 1 }
  0x69   :  { %295 = vsyncpa [#allocation6 + $0x1], 1 }

</bundles_post_ra>
